<compile_context>
chip_gen: v6e
topology: v6e:2x2x1
jax: 0.10.0
libtpu: 0.0.40
codegen_flags: <defaults>
</compile_context>

<pallas_src>
import functools

import jax
import jax.numpy as jnp
from jax.experimental import pallas as pl
from jax.experimental.pallas import tpu as pltpu

_LANE = 128
_TARGET_BLOCK_BYTES = 4 * 1024 * 1024  # per input block (Pallas double-buffers it)


def _round_up(x, m):
    return -(-x // m) * m


def _sublane(itemsize):
    # native sublane tile: 8 for 4-byte, 16 for 2-byte, 32 for 1-byte dtypes
    return max(8, 8 * (4 // itemsize))


def _choose_hw_chunk(H, W, itemsize):
    """Spatial chunk (contiguous multiple of W).  Full H*W unless that is huge."""
    HW = H * W
    sub = _sublane(itemsize)
    if sub * HW * itemsize <= _TARGET_BLOCK_BYTES:
        return HW
    # Split along H so chunks stay contiguous; require a 128-multiple lane width.
    max_h = max(1, _TARGET_BLOCK_BYTES // (sub * W * itemsize))
    h_chunk = 0
    for h in range(1, max_h + 1):
        if H % h == 0 and (h * W) % _LANE == 0:
            h_chunk = h
    if h_chunk == 0:
        return HW  # awkward shape: fall back to full extent (vmem limit is raised)
    return h_chunk * W


def _choose_row_tile(R, hw_chunk, itemsize):
    """Rows per block: multiple of the sublane tile; < 128 or a multiple of 128."""
    sub = _sublane(itemsize)
    max_rows = max(sub, _TARGET_BLOCK_BYTES // (hw_chunk * itemsize))
    max_rows = min(max_rows, 1024, _round_up(R, sub))
    candidates = sorted(
        set(range(sub, min(max_rows, _LANE) + 1, sub))
        | set(range(_LANE, max_rows + 1, _LANE)))
    # Prefer an exact divisor of R (avoids a padding copy in HBM).
    divisors = [t for t in candidates if R % t == 0]
    if divisors and divisors[-1] * 4 >= max_rows:
        return divisors[-1], R
    tile = candidates[-1]
    return tile, _round_up(R, tile)


def _gap_kernel(x_ref, o_ref, acc_ref, *, inv_hw):
    # Grid: (row tiles [parallel], spatial chunks [arbitrary, reduction]).
    k = pl.program_id(1)

    @pl.when(k == 0)
    def _init():
        acc_ref[...] = jnp.zeros_like(acc_ref)

    # f32 accumulation of the lane-axis (spatial) partial sums: (TILE_R, 1).
    x = x_ref[...].astype(jnp.float32)
    acc_ref[...] += jnp.sum(x, axis=-1, keepdims=True)

    @pl.when(k == pl.num_programs(1) - 1)
    def _finalize():
        tile_r = acc_ref.shape[0]
        means = acc_ref[...] * inv_hw  # (TILE_R, 1) f32, static 1/(H*W)
        # Relayout the per-row column (sublanes) to a lane-dense row so the output
        # store/writeback is dense.  Done in 128-row strips: iota eye + select +
        # sublane-sum -> guaranteed-to-lower VPU/XLU work, hidden under the DMA.
        chunk = min(_LANE, tile_r)
        sub_ids = jax.lax.broadcasted_iota(jnp.int32, (chunk, chunk), 0)
        lane_ids = jax.lax.broadcasted_iota(jnp.int32, (chunk, chunk), 1)
        eye = sub_ids == lane_ids
        for c in range(tile_r // chunk):  # static, <= 8 iterations
            col = means[c * chunk:(c + 1) * chunk, :]                 # (chunk, 1)
            row = jnp.sum(jnp.where(eye, col, 0.0), axis=0, keepdims=True)
            o_ref[:, :, c * chunk:(c + 1) * chunk] = (
                row[None, :, :].astype(o_ref.dtype))                  # (1,1,chunk)


def global_avg_pool2d(x):
    """x: (N, C, H, W) -> (N, C, 1, 1), mean over H and W (NCHW, like F.avg_pool2d)."""
    N, C, H, W = x.shape
    R, HW = N * C, H * W
    itemsize = jnp.dtype(x.dtype).itemsize

    hw_chunk = _choose_hw_chunk(H, W, itemsize)
    tile_r, r_pad = _choose_row_tile(R, hw_chunk, itemsize)
    num_row_tiles = r_pad // tile_r
    num_hw_chunks = HW // hw_chunk

    x_rows = x.reshape(R, HW)            # free, contiguous reshape (no HBM copy)
    if r_pad != R:                       # rare: pad rows with zeros (one extra copy)
        x_rows = jnp.pad(x_rows, ((0, r_pad - R), (0, 0)))

    kernel = functools.partial(_gap_kernel, inv_hw=1.0 / HW)

    out = pl.pallas_call(
        kernel,
        # Lane-dense output slab: (row tile, 1, TILE_R); reshaped below.
        out_shape=jax.ShapeDtypeStruct((num_row_tiles, 1, tile_r), x.dtype),
        grid_spec=pltpu.PrefetchScalarGridSpec(
            num_scalar_prefetch=0,
            grid=(num_row_tiles, num_hw_chunks),
            in_specs=[pl.BlockSpec((tile_r, hw_chunk), lambda i, k: (i, k))],
            out_specs=pl.BlockSpec((1, 1, tile_r), lambda i, k: (i, 0, 0)),
            scratch_shapes=[pltpu.VMEM((tile_r, 1), jnp.float32)],
        ),
        compiler_params=pltpu.CompilerParams(
            dimension_semantics=("parallel", "arbitrary"),
            vmem_limit_bytes=64 * 1024 * 1024,
        ),
        cost_estimate=pl.CostEstimate(
            flops=R * HW,                # ~1 add per input element
            transcendentals=0,
            bytes_accessed=R * HW * itemsize + R * itemsize,
        ),
    )(x_rows)

    return out.reshape(-1)[:R].reshape(N, C, 1, 1)


if __name__ == "__main__":
    key = jax.random.PRNGKey(0)
    N, C, H, W = 2, 4, 16, 16
    x = jax.random.normal(key, (N, C, H, W), dtype=jnp.float32)

    y = global_avg_pool2d(x)
    jax.block_until_ready(y)

    ref = jnp.mean(x, axis=(2, 3), keepdims=True)
    assert y.shape == (N, C, 1, 1), y.shape
    assert jnp.allclose(y, ref, atol=1e-5, rtol=1e-5), "mismatch vs reference"

    print("KERNEL_OK")
</pallas_src>

<mosaic_0001>
module attributes {stable_mosaic.version = 11 : i64} {
  func.func @_gap_kernel(%arg0: i32, %arg1: i32, %arg2: memref<8x256xf32, #tpu.memory_space<vmem>>, %arg3: memref<1x1x8xf32, #tpu.memory_space<vmem>>, %arg4: memref<8x1xf32, #tpu.memory_space<vmem>>) attributes {dimension_semantics = [#tpu.dimension_semantics<parallel>, #tpu.dimension_semantics<arbitrary>], iteration_bounds = array<i64: 1, 1>, scalar_prefetch = 0 : i64, scratch_operands = 1 : i64, tpu.core_type = #tpu.core_type<tc>, window_params = [{transform_indices = @transform_0, window_bounds = array<i64: 8, 256>}, {transform_indices = @transform_1, window_bounds = array<i64: 1, 1, 8>}]} {
    %c0_i32 = arith.constant 0 : i32
    %0 = arith.cmpi eq, %arg1, %c0_i32 : i32
    %1 = arith.extui %0 : i1 to i32
    %c0_i32_0 = arith.constant 0 : i32
    %2 = arith.cmpi ne, %1, %c0_i32_0 : i32
    scf.if %2 {
      %cst_8 = arith.constant 0.000000e+00 : f32
      %12 = vector.broadcast %cst_8 : f32 to vector<8x1xf32>
      %c0_9 = arith.constant 0 : index
      %c0_10 = arith.constant 0 : index
      %13 = vector.load %arg4[%c0_9, %c0_10] : memref<8x1xf32, #tpu.memory_space<vmem>>, vector<8x1xf32>
      tpu.vector_store %arg4[%c0_9, %c0_10], %12 {strides = array<i32>} : memref<8x1xf32, #tpu.memory_space<vmem>>, vector<8x1xf32>,
    } else {
    }
    %c0 = arith.constant 0 : index
    %c0_1 = arith.constant 0 : index
    %3 = vector.load %arg2[%c0, %c0_1] : memref<8x256xf32, #tpu.memory_space<vmem>>, vector<8x256xf32>
    %c0_2 = arith.constant 0 : index
    %c0_3 = arith.constant 0 : index
    %4 = vector.load %arg4[%c0_2, %c0_3] : memref<8x1xf32, #tpu.memory_space<vmem>>, vector<8x1xf32>
    %cst = arith.constant dense<0.000000e+00> : vector<8xf32>
    %5 = vector.multi_reduction <add>, %3, %cst [1] : vector<8x256xf32> to vector<8xf32>
    %6 = vector.shape_cast %5 : vector<8xf32> to vector<8x1xf32>
    %7 = arith.addf %4, %6 : vector<8x1xf32>
    %c0_4 = arith.constant 0 : index
    %c0_5 = arith.constant 0 : index
    %8 = vector.load %arg4[%c0_4, %c0_5] : memref<8x1xf32, #tpu.memory_space<vmem>>, vector<8x1xf32>
    tpu.vector_store %arg4[%c0_4, %c0_5], %7 {strides = array<i32>} : memref<8x1xf32, #tpu.memory_space<vmem>>, vector<8x1xf32>,
    %c0_i32_6 = arith.constant 0 : i32
    %9 = arith.cmpi eq, %arg1, %c0_i32_6 : i32
    %10 = arith.extui %9 : i1 to i32
    %c0_i32_7 = arith.constant 0 : i32
    %11 = arith.cmpi ne, %10, %c0_i32_7 : i32
    scf.if %11 {
      %c0_8 = arith.constant 0 : index
      %c0_9 = arith.constant 0 : index
      %12 = vector.load %arg4[%c0_8, %c0_9] : memref<8x1xf32, #tpu.memory_space<vmem>>, vector<8x1xf32>
      %cst_10 = arith.constant 3.906250e-03 : f32
      %13 = vector.broadcast %cst_10 : f32 to vector<8x1xf32>
      %14 = arith.mulf %12, %13 : vector<8x1xf32>
      %15 = tpu.iota {dimensions = array<i32: 0>} : vector<8x8xi32>
      %16 = tpu.iota {dimensions = array<i32: 1>} : vector<8x8xi32>
      %17 = arith.cmpi eq, %15, %16 : vector<8x8xi32>
      %cst_11 = arith.constant 0.000000e+00 : f32
      %18 = vector.shape_cast %14 : vector<8x1xf32> to vector<8x1xf32>
      %19 = vector.broadcast %18 : vector<8x1xf32> to vector<8x8xf32>
      %20 = vector.broadcast %cst_11 : f32 to vector<8x8xf32>
      %21 = arith.select %17, %19, %20 : vector<8x8xi1>, vector<8x8xf32>
      %cst_12 = arith.constant dense<0.000000e+00> : vector<8xf32>
      %22 = vector.multi_reduction <add>, %21, %cst_12 [0] : vector<8x8xf32> to vector<8xf32>
      %23 = vector.shape_cast %22 : vector<8xf32> to vector<1x8xf32>
      %24 = vector.shape_cast %23 : vector<1x8xf32> to vector<1x1x8xf32>
      %c0_13 = arith.constant 0 : index
      %c0_14 = arith.constant 0 : index
      %c0_15 = arith.constant 0 : index
      %25 = vector.load %arg3[%c0_13, %c0_14, %c0_15] : memref<1x1x8xf32, #tpu.memory_space<vmem>>, vector<1x1x8xf32>
      tpu.vector_store %arg3[%c0_13, %c0_14, %c0_15], %24 {strides = array<i32>} : memref<1x1x8xf32, #tpu.memory_space<vmem>>, vector<1x1x8xf32>,
    } else {
    }
    return
  }
  func.func @transform_0(%arg0: i32, %arg1: i32) -> (i32, i32) {
    %c0_i32 = arith.constant 0 : i32
    return %arg0, %arg1 : i32, i32
  }
  func.func @transform_1(%arg0: i32, %arg1: i32) -> (i32, i32, i32) {
    %c0_i32 = arith.constant 0 : i32
    %c0_i32_0 = arith.constant 0 : i32
    %c0_i32_1 = arith.constant 0 : i32
    return %arg0, %c0_i32, %c0_i32_0 : i32, i32, i32
  }
}

</mosaic_0001>

<bundles_post_ra>
// kernel: tpu_custom_call.1
= control target key start
LH: loop header
LB: loop body
LE: loop exit
PB: predicated region body
PF: predicated region fallthrough
CT: control target
= control target key end

     0   :  { %6 = vsyncpa [#allocation4], 0  ;;  %s146_s0 = inlined_call_operand.hbm [shape: f32[8,256], index: 0, kind: input, shape index: {}]   ;;  %s147_s1 = inlined_call_operand.hbm [shape: f32[1,1,8], index: 1, kind: output, shape index: {}]  }
   0x1   :  { %7 = vsyncpa [#allocation5], 0  ;;  %s126_s6 = smov [#allocation3]  }
   0x2   :  { %s14_s7 = sshll.u32 %s126_s6, 4  ;;  %s15_s7 = int_to_ptr.vmem [resolvable:$true] %s14_s7 }
   0x3   :  { %s90_s8 = scalar_lea.vmem %s15_s7, 256  ;;  %p95_p1 = scmp.lt.s32.totalorder %s15_s7, %s15_s7 }
   0x4   :  { %p91_p0 = scmp.ne.s32.totalorder %s15_s7, %s90_s8  ;;  %p96_p2 = scmp.lt.s32.totalorder %s90_s8, %s90_s8 }
   0x6   :  { %p97_p3 = por %p96_p2, %p95_p1 }
   0x8   :  { %p98_p4 = pnand %p97_p3, %p91_p0 }
   0xa   :  { %101 = shalt.err (!%p98_p4)
}
   0xb   :  { %17 = dma.hbm_to_vmem [thread:$0]  %s146_s0, 256, %s15_s7, [#allocation4]  }
   0xc   :  { %122 = dma.done.wait [#allocation4], 256  }
   0xd   :  { %123 = vsyncadd [#allocation4], 4294967040  ;;  %vm25_vm0 = vcmask 7168   ;;  %v127_v0 = vmov 0.0   ;;  %v27_v1 = vld [vmem:[#allocation3] sm:$0xff]  ;;  %v28_v2 = vld [vmem:[#allocation3 + $0x8] sm:$0xff]  ;;  %v41_v10 = vlaneseq }
   0xe   :  { %26 = vst.msk [vmem:[#allocation2] sm:$0xff] %vm25_vm0, %v127_v0  ;;  %v30_v3 = vadd.f32 %v28_v2, %v27_v1  ;;  %v128_v4 = vmov 0   ;;  %vm52_vm2 = vcmask 64512   ;;  %s129_s0 = smov [#allocation6]   ;;  %vm60_vm3 = vcmask 57344  }
   0xf   :  { %81 = vset.pattern.permute.xlu0 %v128_v4  ;;  %v42_v11 = vshrl.u32 %v41_v10, 7  ;;  %v44_v12 = vand.u32 127, %v41_v10  ;;  %s68_s11 = sshll.u32 %s129_s0, 4  ;;  %s69_s11 = int_to_ptr.vmem [resolvable:$true] %s68_s11 }
  0x10   :  { %31 = vadd.xlane.f32.xlu0 %v30_v3  ;;  %s102_s12 = scalar_lea.vmem %s69_s11, 16  ;;  %s106_s13 = scalar_lea.vmem %s69_s11, 32 }
  0x11   :  { %vm45_vm1 = vcmp.eq.s32.totalorder %v42_v11, %v44_v12  ;;  %p103_p5 = scmp.ne.s32.totalorder %s69_s11, %s102_s12  ;;  %p107_p6 = scmp.lt.s32.totalorder %s69_s11, %s69_s11 }
  0x12   :  { %p108_p7 = scmp.lt.s32.totalorder %s106_s13, %s102_s12 }
  0x14   :  { %p109_p8 = por %p108_p7, %p107_p6 }
  0x15   :  { %v29_v5 = vld [vmem:[#allocation2] sm:$0xff] }
  0x16   :  { %p110_p9 = pnand %p109_p8, %p103_p5 }
  0x99   :  { %v32_v6 = vpop.xlane.xlu0 %31 }
  0x9a   :  { %v33_v7 = vadd.f32 %v32_v6, %v29_v5 }
  0x9c   :  { %35 = vst.msk [vmem:[#allocation2] sm:$0xff] %vm25_vm0, %v33_v7 }
  0xa3   :  { %v39_v8 = vld [vmem:[#allocation2] sm:$0xff] }
  0xa4   :  { %v40_v9 = vmul.f32 0.00390625, %v39_v8 }
  0xa6   :  { %48 = vperm.xlu0 %81, %v40_v9  }
 0x121   :  { %v49_v13 = vpop.permute.xlu0 %48 }
 0x122   :  { %v51_v14 = vsel %vm45_vm1, %v49_v13, 0.0 }
 0x123   :  { %v53_v15 = vsel %vm52_vm2, %v51_v14, 0.0 }
 0x124   :  { %v54_v16 = vrot.slane %v53_v15, 4 }
 0x126   :  { %v55_v17 = vadd.f32 %v54_v16, %v53_v15 }
 0x128   :  { %v56_v18 = vrot.slane %v55_v17, 2 }
 0x12a   :  { %v57_v19 = vadd.f32 %v56_v18, %v55_v17 }
 0x12c   :  { %v58_v20 = vrot.slane %v57_v19, 1 }
 0x12e   :  { %v59_v21 = vadd.f32 %v58_v20, %v57_v19 }
 0x130   :  { %61 = vst.msk [vmem:[#allocation6] sm:$0x1] %vm60_vm3, %v59_v21 }
 0x131   :  { %113 = shalt.err (!%p110_p9)
}
 0x132   :  { %71 = dma.vmem_to_hbm [thread:$0]  %s69_s11, 16, %s147_s1, [#allocation5]  }
 0x133   :  { %124 = dma.done.wait [#allocation5], 16  }
 0x134   :  { %125 = vsyncadd [#allocation5], 4294967280 }
 0x135   :  { %75 = vsyncpa [#allocation4], 1 }
 0x136   :  { %76 = vsyncpa [#allocation5], 1 }

</bundles_post_ra>
